<compile_context>
chip_gen: v7x
topology: tpu7x:2x2x1
jax: 0.10.0
libtpu: 0.0.40
codegen_flags: <defaults>
</compile_context>

<pallas_src>
import math
import jax
import jax.numpy as jnp
from jax.experimental import pallas as pl
from jax.experimental.pallas import tpu as pltpu


def _round_up(x, m):
    return ((x + m - 1) // m) * m


def _fused_actor_critic_kernel(state_ref, w1, b1, w2, b2, w3, b3, w4t, b4t, out_ref):
    """Fused actor+critic pass for one (TB, S) batch tile.

    Matmul operands are bf16 (f32 accumulation); bias-add / ReLU in f32.
    Final layer computed transposed so the output is lane-dense in the batch dim:
    out rows = [action_mean (A) | value | logprob | zero-pad].
    """
    x = state_ref[...]                                                        # (TB, S) bf16
    h = jnp.dot(x, w1[...], preferred_element_type=jnp.float32) + b1[...]
    h = jnp.maximum(h, 0.0).astype(jnp.bfloat16)                              # (TB, 256)
    h = jnp.dot(h, w2[...], preferred_element_type=jnp.float32) + b2[...]
    h = jnp.maximum(h, 0.0).astype(jnp.bfloat16)                              # (TB, 128)
    h = jnp.dot(h, w3[...], preferred_element_type=jnp.float32) + b3[...]
    h = jnp.maximum(h, 0.0).astype(jnp.bfloat16)                              # (TB, 64)
    # (out_rows, 64) contracted with (TB, 64) on the 64-dim -> (out_rows, TB).
    out_t = jax.lax.dot_general(w4t[...], h, (((1,), (1,)), ((), ())),
                                preferred_element_type=jnp.float32)
    out_ref[...] = out_t + b4t[...]


def _block_diag(a, c):
    top = jnp.concatenate([a, jnp.zeros((a.shape[0], c.shape[1]), a.dtype)], axis=1)
    bot = jnp.concatenate([jnp.zeros((c.shape[0], a.shape[1]), c.dtype), c], axis=1)
    return jnp.concatenate([top, bot], axis=0)


def pack_actor_critic_params(actor_params, critic_params, action_var):
    """Block-diagonally fuse actor & critic weights; fold the constant MVN log-prob
    into the (transposed) last-layer bias.  Call ONCE when parameters change and
    pass the result to actor_critic_forward (hoisted out of the hot path)."""
    (aw1, ab1), (aw2, ab2), (aw3, ab3), (aw4, ab4) = actor_params
    (cw1, cb1), (cw2, cb2), (cw3, cb3), (cw4, cb4) = critic_params
    A = aw4.shape[1]
    h3a = aw4.shape[0]                       # actor's last hidden width (32)
    out_rows = _round_up(A + 2, 8)           # [mean(A) | value | logprob] padded to sublanes

    w1 = jnp.concatenate([aw1, cw1], axis=1)                                  # (S, 256)
    b1 = jnp.concatenate([ab1, cb1], axis=0).reshape(1, -1)                   # (1, 256)
    w2 = _block_diag(aw2, cw2)                                                # (256, 128)
    b2 = jnp.concatenate([ab2, cb2], axis=0).reshape(1, -1)                   # (1, 128)
    w3 = _block_diag(aw3, cw3)                                                # (128, 64)
    b3 = jnp.concatenate([ab3, cb3], axis=0).reshape(1, -1)                   # (1, 64)

    # Last layer stored TRANSPOSED: rows = outputs, cols = fused hidden (64).
    w4t = jnp.zeros((out_rows, h3a + cw4.shape[0]), jnp.float32)
    w4t = w4t.at[:A, :h3a].set(aw4.T)                 # actor mean rows
    w4t = w4t.at[A, h3a:].set(cw4[:, 0])              # critic value row
    logp_const = -0.5 * (A * math.log(2.0 * math.pi) + jnp.sum(jnp.log(action_var)))
    b4t = jnp.zeros((out_rows, 1), jnp.float32)
    b4t = b4t.at[:A, 0].set(ab4)
    b4t = b4t.at[A, 0].set(cb4[0])
    b4t = b4t.at[A + 1, 0].set(logp_const)            # constant log-prob (action == mean)

    bf = jnp.bfloat16
    return (w1.astype(bf), b1, w2.astype(bf), b2, w3.astype(bf), b3,
            w4t.astype(bf), b4t)


def actor_critic_forward(state, packed_params, action_dim):
    """state: (B, state_dim) f32.  packed_params: output of pack_actor_critic_params."""
    B, S = state.shape
    A = action_dim
    w1, b1, w2, b2, w3, b3, w4t, b4t = packed_params
    out_rows = w4t.shape[0]

    # Batch tiling: big tiles amortize per-step pipeline overhead; >=2 (even) grid
    # steps for non-trivial B so the "parallel" axis feeds both v7x TensorCores.
    TB_CAP = 2048                                   # sweepable up to ~4096
    if B <= 256:
        n_steps = 1
        tb = _round_up(max(B, 8), 8)
    else:
        n_steps = max(2, 2 * pl.cdiv(B, 2 * TB_CAP))
        tb = _round_up(pl.cdiv(B, n_steps), 128)    # lane-dense output blocks
    b_pad = tb * n_steps

    state_p = state if b_pad == B else jnp.pad(state, ((0, b_pad - B), (0, 0)))
    state_bf = state_p.astype(jnp.bfloat16)         # halve state DMA bytes

    params = (w1, b1, w2, b2, w3, b3, w4t, b4t)
    weight_specs = [pl.BlockSpec(p.shape, lambda i: (0, 0)) for p in params]

    flops = 2 * b_pad * (S * 256 + 256 * 128 + 128 * 64 + 64 * out_rows)
    bytes_accessed = (int(state_bf.size) * 2
                      + sum(int(p.size) * p.dtype.itemsize for p in params)
                      + b_pad * out_rows * 4)

    out = pl.pallas_call(
        _fused_actor_critic_kernel,
        out_shape=jax.ShapeDtypeStruct((out_rows, b_pad), jnp.float32),
        grid=(n_steps,),
        in_specs=[pl.BlockSpec((tb, S), lambda i: (i, 0))] + weight_specs,
        out_specs=pl.BlockSpec((out_rows, tb), lambda i: (0, i)),
        compiler_params=pltpu.CompilerParams(
            dimension_semantics=("parallel",),
            vmem_limit_bytes=32 * 1024 * 1024),      # v5e default (16 MiB) is too small for big tiles
        cost_estimate=pl.CostEstimate(flops=flops, transcendentals=0,
                                      bytes_accessed=bytes_accessed),
    )(state_bf, *params)

    # Padded batch lanes (B..b_pad) contain garbage (biases through ReLU) — slice off.
    action_mean = out[:A, :B].T                      # (B, A)
    value = out[A:A + 1, :B].T                       # (B, 1)
    logprob = out[A + 1, :B]                         # (B,)  constant since action == mean
    action = action_mean                             # random_action == False
    # TODO(synk): stochastic sampling path (random_action=True) not implemented.
    return action, logprob, value, action_mean


def _init_linear(key, fan_in, fan_out):
    """Deterministic PyTorch-style uniform init; returns (W_transposed, b)."""
    kw, kb = jax.random.split(key)
    bound = 1.0 / math.sqrt(fan_in)
    w = jax.random.uniform(kw, (fan_in, fan_out), jnp.float32, -bound, bound)
    b = jax.random.uniform(kb, (fan_out,), jnp.float32, -bound, bound)
    return w, b


if __name__ == "__main__":
    state_dim = 16
    action_dim = 4
    batch = 8
    exploration_param = 0.05

    key = jax.random.PRNGKey(0)
    keys = jax.random.split(key, 9)

    actor_dims = [(state_dim, 128), (128, 64), (64, 32), (32, action_dim)]
    critic_dims = [(state_dim, 128), (128, 64), (64, 32), (32, 1)]

    actor_params = [_init_linear(keys[i], fi, fo) for i, (fi, fo) in enumerate(actor_dims)]
    critic_params = [_init_linear(keys[4 + i], fi, fo) for i, (fi, fo) in enumerate(critic_dims)]
    action_var = jnp.full((action_dim,), exploration_param ** 2, dtype=jnp.float32)

    state = jax.random.normal(keys[8], (batch, state_dim), jnp.float32)

    # Pack weights ONCE (hoisted out of the per-call forward path).
    packed = pack_actor_critic_params(actor_params, critic_params, action_var)
    packed = jax.block_until_ready(packed)

    action, logprob, value, action_mean = actor_critic_forward(state, packed, action_dim)
    jax.block_until_ready((action, logprob, value, action_mean))

    # Pure-JAX f32 reference.
    def mlp(x, params):
        for i, (w, b) in enumerate(params):
            x = x @ w + b
            if i < len(params) - 1:
                x = jnp.maximum(x, 0.0)
        return x

    mean_ref = mlp(state, actor_params)
    value_ref = mlp(state, critic_params)
    logp_ref = jnp.full(
        (batch,),
        -0.5 * (action_dim * math.log(2.0 * math.pi) + float(jnp.sum(jnp.log(action_var)))),
        jnp.float32)

    # bf16 MXU operands (f32 accumulation) -> loosened tolerance vs f32 reference.
    assert jnp.allclose(action_mean, mean_ref, atol=3e-2, rtol=3e-2), "action_mean mismatch"
    assert jnp.allclose(action, mean_ref, atol=3e-2, rtol=3e-2), "action mismatch"
    assert jnp.allclose(value, value_ref, atol=3e-2, rtol=3e-2), "value mismatch"
    assert jnp.allclose(logprob, logp_ref, atol=1e-4), "logprob mismatch"

    print("KERNEL_OK")
</pallas_src>

<mosaic_0001>
module attributes {stable_mosaic.version = 11 : i64} {
  func.func @_fused_actor_critic_kernel(%arg0: i32, %arg1: memref<8x16xbf16, #tpu.memory_space<vmem>>, %arg2: memref<16x256xbf16, #tpu.memory_space<vmem>>, %arg3: memref<1x256xf32, #tpu.memory_space<vmem>>, %arg4: memref<256x128xbf16, #tpu.memory_space<vmem>>, %arg5: memref<1x128xf32, #tpu.memory_space<vmem>>, %arg6: memref<128x64xbf16, #tpu.memory_space<vmem>>, %arg7: memref<1x64xf32, #tpu.memory_space<vmem>>, %arg8: memref<8x64xbf16, #tpu.memory_space<vmem>>, %arg9: memref<8x1xf32, #tpu.memory_space<vmem>>, %arg10: memref<8x8xf32, #tpu.memory_space<vmem>>) attributes {dimension_semantics = [#tpu.dimension_semantics<parallel>], iteration_bounds = array<i64: 1>, scalar_prefetch = 0 : i64, scratch_operands = 0 : i64, tpu.core_type = #tpu.core_type<tc>, window_params = [{transform_indices = @transform_0, window_bounds = array<i64: 8, 16>}, {pipeline_mode = #tpu.pipeline_mode<synchronous>, transform_indices = @transform_1, window_bounds = array<i64: 16, 256>}, {pipeline_mode = #tpu.pipeline_mode<synchronous>, transform_indices = @transform_2, window_bounds = array<i64: 1, 256>}, {pipeline_mode = #tpu.pipeline_mode<synchronous>, transform_indices = @transform_3, window_bounds = array<i64: 256, 128>}, {pipeline_mode = #tpu.pipeline_mode<synchronous>, transform_indices = @transform_4, window_bounds = array<i64: 1, 128>}, {pipeline_mode = #tpu.pipeline_mode<synchronous>, transform_indices = @transform_5, window_bounds = array<i64: 128, 64>}, {pipeline_mode = #tpu.pipeline_mode<synchronous>, transform_indices = @transform_6, window_bounds = array<i64: 1, 64>}, {pipeline_mode = #tpu.pipeline_mode<synchronous>, transform_indices = @transform_7, window_bounds = array<i64: 8, 64>}, {pipeline_mode = #tpu.pipeline_mode<synchronous>, transform_indices = @transform_8, window_bounds = array<i64: 8, 1>}, {transform_indices = @transform_9, window_bounds = array<i64: 8, 8>}]} {
    %c0 = arith.constant 0 : index
    %c0_0 = arith.constant 0 : index
    %0 = vector.load %arg1[%c0, %c0_0] : memref<8x16xbf16, #tpu.memory_space<vmem>>, vector<8x16xbf16>
    %c0_1 = arith.constant 0 : index
    %c0_2 = arith.constant 0 : index
    %1 = vector.load %arg2[%c0_1, %c0_2] : memref<16x256xbf16, #tpu.memory_space<vmem>>, vector<16x256xbf16>
    %cst = arith.constant dense<0.000000e+00> : vector<8x256xf32>
    %2 = tpu.matmul %0, %1, %cst {dimension_numbers = #tpu.dot_dimension_numbers<[1], [0], [0], [1], [0, 0, 1, 1], [], []>} : vector<8x16xbf16>, vector<16x256xbf16>, vector<8x256xf32> -> vector<8x256xf32>
    %c0_3 = arith.constant 0 : index
    %c0_4 = arith.constant 0 : index
    %3 = vector.load %arg3[%c0_3, %c0_4] : memref<1x256xf32, #tpu.memory_space<vmem>>, vector<1x256xf32>
    %4 = vector.broadcast %3 : vector<1x256xf32> to vector<8x256xf32>
    %5 = arith.addf %2, %4 : vector<8x256xf32>
    %cst_5 = arith.constant 0.000000e+00 : f32
    %6 = vector.broadcast %cst_5 : f32 to vector<8x256xf32>
    %7 = arith.maximumf %5, %6 : vector<8x256xf32>
    %8 = arith.truncf %7 : vector<8x256xf32> to vector<8x256xbf16>
    %c0_6 = arith.constant 0 : index
    %c0_7 = arith.constant 0 : index
    %9 = vector.load %arg4[%c0_6, %c0_7] : memref<256x128xbf16, #tpu.memory_space<vmem>>, vector<256x128xbf16>
    %cst_8 = arith.constant dense<0.000000e+00> : vector<8x128xf32>
    %10 = tpu.matmul %8, %9, %cst_8 {dimension_numbers = #tpu.dot_dimension_numbers<[1], [0], [0], [1], [0, 0, 1, 1], [], []>} : vector<8x256xbf16>, vector<256x128xbf16>, vector<8x128xf32> -> vector<8x128xf32>
    %c0_9 = arith.constant 0 : index
    %c0_10 = arith.constant 0 : index
    %11 = vector.load %arg5[%c0_9, %c0_10] : memref<1x128xf32, #tpu.memory_space<vmem>>, vector<1x128xf32>
    %12 = vector.broadcast %11 : vector<1x128xf32> to vector<8x128xf32>
    %13 = arith.addf %10, %12 : vector<8x128xf32>
    %cst_11 = arith.constant 0.000000e+00 : f32
    %14 = vector.broadcast %cst_11 : f32 to vector<8x128xf32>
    %15 = arith.maximumf %13, %14 : vector<8x128xf32>
    %16 = arith.truncf %15 : vector<8x128xf32> to vector<8x128xbf16>
    %c0_12 = arith.constant 0 : index
    %c0_13 = arith.constant 0 : index
    %17 = vector.load %arg6[%c0_12, %c0_13] : memref<128x64xbf16, #tpu.memory_space<vmem>>, vector<128x64xbf16>
    %cst_14 = arith.constant dense<0.000000e+00> : vector<8x64xf32>
    %18 = tpu.matmul %16, %17, %cst_14 {dimension_numbers = #tpu.dot_dimension_numbers<[1], [0], [0], [1], [0, 0, 1, 1], [], []>} : vector<8x128xbf16>, vector<128x64xbf16>, vector<8x64xf32> -> vector<8x64xf32>
    %c0_15 = arith.constant 0 : index
    %c0_16 = arith.constant 0 : index
    %19 = vector.load %arg7[%c0_15, %c0_16] : memref<1x64xf32, #tpu.memory_space<vmem>>, vector<1x64xf32>
    %20 = vector.broadcast %19 : vector<1x64xf32> to vector<8x64xf32>
    %21 = arith.addf %18, %20 : vector<8x64xf32>
    %cst_17 = arith.constant 0.000000e+00 : f32
    %22 = vector.broadcast %cst_17 : f32 to vector<8x64xf32>
    %23 = arith.maximumf %21, %22 : vector<8x64xf32>
    %24 = arith.truncf %23 : vector<8x64xf32> to vector<8x64xbf16>
    %c0_18 = arith.constant 0 : index
    %c0_19 = arith.constant 0 : index
    %25 = vector.load %arg8[%c0_18, %c0_19] : memref<8x64xbf16, #tpu.memory_space<vmem>>, vector<8x64xbf16>
    %cst_20 = arith.constant dense<0.000000e+00> : vector<8x8xf32>
    %26 = tpu.matmul %25, %24, %cst_20 {dimension_numbers = #tpu.dot_dimension_numbers<[1], [1], [0], [0], [0, 0, 1, 0], [], []>} : vector<8x64xbf16>, vector<8x64xbf16>, vector<8x8xf32> -> vector<8x8xf32>
    %c0_21 = arith.constant 0 : index
    %c0_22 = arith.constant 0 : index
    %27 = vector.load %arg9[%c0_21, %c0_22] : memref<8x1xf32, #tpu.memory_space<vmem>>, vector<8x1xf32>
    %28 = vector.broadcast %27 : vector<8x1xf32> to vector<8x8xf32>
    %29 = arith.addf %26, %28 : vector<8x8xf32>
    %c0_23 = arith.constant 0 : index
    %c0_24 = arith.constant 0 : index
    %30 = vector.load %arg10[%c0_23, %c0_24] : memref<8x8xf32, #tpu.memory_space<vmem>>, vector<8x8xf32>
    tpu.vector_store %arg10[%c0_23, %c0_24], %29 {strides = array<i32>} : memref<8x8xf32, #tpu.memory_space<vmem>>, vector<8x8xf32>,
    return
  }
  func.func @transform_0(%arg0: i32) -> (i32, i32) {
    %c0_i32 = arith.constant 0 : i32
    %c0_i32_0 = arith.constant 0 : i32
    return %arg0, %c0_i32 : i32, i32
  }
  func.func @transform_1(%arg0: i32) -> (i32, i32) {
    %c0_i32 = arith.constant 0 : i32
    %c0_i32_0 = arith.constant 0 : i32
    %c0_i32_1 = arith.constant 0 : i32
    return %c0_i32, %c0_i32_0 : i32, i32
  }
  func.func @transform_2(%arg0: i32) -> (i32, i32) {
    %c0_i32 = arith.constant 0 : i32
    %c0_i32_0 = arith.constant 0 : i32
    %c0_i32_1 = arith.constant 0 : i32
    return %c0_i32, %c0_i32_0 : i32, i32
  }
  func.func @transform_3(%arg0: i32) -> (i32, i32) {
    %c0_i32 = arith.constant 0 : i32
    %c0_i32_0 = arith.constant 0 : i32
    %c0_i32_1 = arith.constant 0 : i32
    return %c0_i32, %c0_i32_0 : i32, i32
  }
  func.func @transform_4(%arg0: i32) -> (i32, i32) {
    %c0_i32 = arith.constant 0 : i32
    %c0_i32_0 = arith.constant 0 : i32
    %c0_i32_1 = arith.constant 0 : i32
    return %c0_i32, %c0_i32_0 : i32, i32
  }
  func.func @transform_5(%arg0: i32) -> (i32, i32) {
    %c0_i32 = arith.constant 0 : i32
    %c0_i32_0 = arith.constant 0 : i32
    %c0_i32_1 = arith.constant 0 : i32
    return %c0_i32, %c0_i32_0 : i32, i32
  }
  func.func @transform_6(%arg0: i32) -> (i32, i32) {
    %c0_i32 = arith.constant 0 : i32
    %c0_i32_0 = arith.constant 0 : i32
    %c0_i32_1 = arith.constant 0 : i32
    return %c0_i32, %c0_i32_0 : i32, i32
  }
  func.func @transform_7(%arg0: i32) -> (i32, i32) {
    %c0_i32 = arith.constant 0 : i32
    %c0_i32_0 = arith.constant 0 : i32
    %c0_i32_1 = arith.constant 0 : i32
    return %c0_i32, %c0_i32_0 : i32, i32
  }
  func.func @transform_8(%arg0: i32) -> (i32, i32) {
    %c0_i32 = arith.constant 0 : i32
    %c0_i32_0 = arith.constant 0 : i32
    %c0_i32_1 = arith.constant 0 : i32
    return %c0_i32, %c0_i32_0 : i32, i32
  }
  func.func @transform_9(%arg0: i32) -> (i32, i32) {
    %c0_i32 = arith.constant 0 : i32
    %c0_i32_0 = arith.constant 0 : i32
    return %c0_i32, %arg0 : i32, i32
  }
}

</mosaic_0001>

<bundles_post_ra>
// kernel: tpu_custom_call.1
= control target key start
LH: loop header
LB: loop body
LE: loop exit
PB: predicated region body
PF: predicated region fallthrough
CT: control target
= control target key end

     0   :  { %14 = vsyncpa [#allocation3], 0  ;;  %s784_s0 = inlined_call_operand.vmem [shape: bf16[8,16], index: 0, kind: input, shape index: {}]   ;;  %s785_s1 = inlined_call_operand.vmem [shape: bf16[16,256], index: 1, kind: input, shape index: {}]   ;;  %s786_s2 = inlined_call_operand.vmem [shape: f32[1,256], index: 2, kind: input, shape index: {}]   ;;  %s787_s3 = inlined_call_operand.hbm [shape: bf16[256,128], index: 3, kind: input, shape index: {}]   ;;  %s788_s4 = inlined_call_operand.vmem [shape: f32[1,128], index: 4, kind: input, shape index: {}]   ;;  %s789_s5 = inlined_call_operand.vmem [shape: bf16[128,64], index: 5, kind: input, shape index: {}]   ;;  %s790_s6 = inlined_call_operand.vmem [shape: f32[1,64], index: 6, kind: input, shape index: {}]   ;;  %s791_s7 = inlined_call_operand.vmem [shape: bf16[8,64], index: 7, kind: input, shape index: {}]   ;;  %s792_s8 = inlined_call_operand.vmem [shape: f32[8,1], index: 8, kind: input, shape index: {}]   ;;  %s793_s9 = inlined_call_operand.hbm [shape: f32[8,8], index: 9, kind: output, shape index: {}]  }
   0x1   :  { %15 = vsyncpa [#allocation4], 0  ;;  %s655_s30 = smov [#allocation2]   ;;  %s607_s13 = scalar_lea.hbm %s787_s3, 2048 }
   0x2   :  { %s27_s10 = sshll.u32 %s655_s30, 4  ;;  %p608_p0 = scmp.ne.s32.totalorder %s787_s3, %s607_s13  ;;  %s28_s10 = int_to_ptr.vmem [resolvable:$true] %s27_s10 }
   0x3   :  { %p611_p1 = scmp.lt.u32.totalorder %s607_s13, %s787_s3 }
   0x5   :  { %p613_p2 = pnand %p611_p1, %p608_p0 }
   0x7   :  { %616 = shalt.err (!%p613_p2)
}
   0x8   :  { %s617_s18 = scalar_lea.vmem %s28_s10, 2048  ;;  %p622_p4 = scmp.lt.s32.totalorder %s28_s10, %s28_s10 }
   0x9   :  { %p618_p3 = scmp.ne.s32.totalorder %s28_s10, %s617_s18  ;;  %p623_p5 = scmp.lt.s32.totalorder %s617_s18, %s617_s18 }
   0xb   :  { %p624_p6 = por %p623_p5, %p622_p4 }
   0xd   :  { %p625_p7 = pnand %p624_p6, %p618_p3 }
   0xf   :  { %628 = shalt.err (!%p625_p7)
}
  0x10   :  { %s656_s19 = smov 64   ;;  %s657_s20 = smov 4  }
  0x11   :  { %33 = dma.hbm_to_vmem [thread:$0]  %s787_s3, 2048, %s28_s10, [#allocation3], %s656_s19, %s656_s19, %s657_s20  }
  0x12   :  { %651 = dma.done.wait [#allocation3], 2048  }
  0x13   :  { %652 = vsyncadd [#allocation3], 4294965248  ;;  %v658_v0 = vmov 0   ;;  %v580_v1 = vld [vmem:[%s785_s1 + $0x4] ss:$8 sps:$4 sm:$0xff]   ;;  %vm73_vm0 = vcmask 130048   ;;  %v53_v27 = vlaneseq }
  0x14   :  { %109 = vmatprep.mubr.bf16.mxu0 %v658_v0  ;;  %579 = vset.pattern.permute.xlu0 %v658_v0  ;;  %v582_v2 = vld [vmem:[%s785_s1] ss:$8 sps:$4 sm:$0xff]   ;;  %v587_v8 = vld [vmem:[#allocation2 + $0x50] sm:$0xff]   ;;  %v589_v10 = vld [vmem:[#allocation2 + $0x58] sm:$0xff]   ;;  %v659_v21 = vmov 0.0   ;;  %vm660_vm1 = vmmov 0  }
  0x15   :  { %v48_v3 = vld [vmem:[%s784_s0] sm:$0xf]  ;;  %77 = vmatprep.subr.bf16.mxu0 %v580_v1  ;;  %v585_v6 = vld [vmem:[#allocation2 + $0x48] sm:$0xff]   ;;  %v588_v9 = vld [vmem:[#allocation2 + $0x10] sm:$0xff]   ;;  %v54_v28 = vshrl.u32 %v53_v27, 7  ;;  %vm419_vm2 = vcmask 523264  }
  0x16   :  { %v583_v4 = vld [vmem:[#allocation2 + $0x40] sm:$0xff]   ;;  %78 = vmatpush1.bf16.msra.mxu0 %v582_v2  ;;  %v586_v7 = vld [vmem:[#allocation2 + $0x8] sm:$0xff]   ;;  %v590_v11 = vld [vmem:[#allocation2 + $0x18] sm:$0xff]   ;;  %vm466_vm3 = vcmask 64512  }
  0x17   :  { %v584_v5 = vld [vmem:[#allocation2] sm:$0xff]   ;;  %513 = vmatprep.subr.bf16.mxu1 %v583_v4  ;;  %v593_v14 = vld [vmem:[#allocation2 + $0x68] sm:$0xff]   ;;  %v595_v16 = vld [vmem:[#allocation2 + $0x70] sm:$0xff]   ;;  %546 = vmatprep.subr.bf16.mxu0 %v659_v21  ;;  %v55_v29 = vsub.s32 0, %v54_v28  ;;  %v59_v31 = vsub.s32 1, %v54_v28 }
  0x18   :  { %514 = vmatpush3.bf16.msra.mxu1 %v584_v5  ;;  %v591_v12 = vld [vmem:[#allocation2 + $0x60] sm:$0xff]   ;;  %v594_v15 = vld [vmem:[#allocation2 + $0x28] sm:$0xff]   ;;  %v596_v17 = vld [vmem:[#allocation2 + $0x30] sm:$0xff]  }
  0x19   :  { %485 = vmatmul.mubr.msk.bf16.vlgmr.msra.gmra.mrb[0].mxu0 %vm73_vm0, %v48_v3  ;;  %515 = vmatprep.subr.bf16.mxu1 %v585_v6  ;;  %v592_v13 = vld [vmem:[#allocation2 + $0x20] sm:$0xff]   ;;  %v597_v18 = vld [vmem:[#allocation2 + $0x78] sm:$0xff]   ;;  %v600_v22 = vld [vmem:[%s789_s5 + $0x8] sm:$0xff]  }
  0x1a   :  { %v598_v19 = vld [vmem:[#allocation2 + $0x38] sm:$0xff]   ;;  %v599_v20 = vld [vmem:[%s789_s5] sm:$0xff]   ;;  %v601_v23 = vld [vmem:[%s789_s5 + $0x10] sm:$0xff]   ;;  %562 = vmatprep.mubr.msk.bf16.mxu0 %vm660_vm1, %v659_v21 }
  0x1b   :  { %547 = vmatpush3.bf16.msra.mxu0 %v599_v20  ;;  %v602_v24 = vld [vmem:[%s789_s5 + $0x18] sm:$0xff]   ;;  %v603_v25 = vld [vmem:[%s789_s5 + $0x20] sm:$0xff]   ;;  %v604_v26 = vld [vmem:[%s789_s5 + $0x28] sm:$0xff]  }
  0x1c   :  { %516 = vmatpush3.bf16.msra.mxu1 %v586_v7  ;;  %548 = vmatprep.subr.bf16.mxu0 %v659_v21  ;;  %v51_v30 = vld [vmem:[%s786_s2] sm:$0x3]  ;;  %v605_v44 = vld [vmem:[%s789_s5 + $0x30] sm:$0xff]   ;;  %v606_v45 = vld [vmem:[%s789_s5 + $0x38] sm:$0xff]  }
  0x1d   :  { %517 = vmatprep.subr.bf16.mxu1 %v587_v8  ;;  %v56_v32 = vrot.slane %v51_v30, %v55_v29  ;;  %v60_v33 = vrot.slane %v51_v30, %v59_v31  ;;  %v486_v47 = vld [vmem:[%s788_s4] ss:$0 sm:$0xff] }
  0x1e   :  { %v413_v55 = vld [vmem:[%s792_s8] sm:$0xff]  ;;  %s661_s8 = smov [#allocation5]  }
  0x1f   :  { %549 = vmatpush3.bf16.msra.mxu0 %v600_v22  ;;  %416 = vperm.xlu0 %579, %v413_v55   ;;  %v503_v56 = vld [vmem:[%s790_s6] ss:$0 sm:$0xff]  ;;  %s474_s28 = sshll.u32 %s661_s8, 4  ;;  %s475_s28 = int_to_ptr.vmem [resolvable:$true] %s474_s28 }
  0x20   :  { %518 = vmatpush3.bf16.msra.mxu1 %v588_v9  ;;  %550 = vmatprep.subr.bf16.mxu0 %v659_v21  ;;  %v412_v1 = vld [vmem:[%s791_s7] sm:$0xf]  ;;  %s629_s6 = scalar_lea.vmem %s475_s28, 128  ;;  %p634_p9 = scmp.lt.s32.totalorder %s475_s28, %s475_s28 }
  0x21   :  { %519 = vmatprep.subr.bf16.mxu1 %v589_v10  ;;  %p630_p8 = scmp.ne.s32.totalorder %s475_s28, %s629_s6  ;;  %p635_p10 = scmp.lt.s32.totalorder %s629_s6, %s629_s6 }
  0x23   :  { %551 = vmatpush3.bf16.msra.mxu0 %v601_v23  ;;  %p636_p11 = por %p635_p10, %p634_p9 }
  0x24   :  { %520 = vmatpush3.bf16.msra.mxu1 %v590_v11  ;;  %552 = vmatprep.subr.bf16.mxu0 %v659_v21 }
  0x25   :  { %521 = vmatprep.subr.bf16.mxu1 %v591_v12  ;;  %p637_p12 = pnand %p636_p11, %p630_p8 }
  0x27   :  { %553 = vmatpush3.bf16.msra.mxu0 %v602_v24 }
  0x28   :  { %522 = vmatpush3.bf16.msra.mxu1 %v592_v13  ;;  %554 = vmatprep.subr.bf16.mxu0 %v659_v21 }
  0x29   :  { %523 = vmatprep.subr.bf16.mxu1 %v593_v14 }
  0x2b   :  { %555 = vmatpush3.bf16.msra.mxu0 %v603_v25 }
  0x2c   :  { %524 = vmatpush3.bf16.msra.mxu1 %v594_v15  ;;  %556 = vmatprep.subr.bf16.mxu0 %v659_v21 }
  0x2d   :  { %525 = vmatprep.subr.bf16.mxu1 %v595_v16 }
  0x2f   :  { %557 = vmatpush3.bf16.msra.mxu0 %v604_v26 }
  0x30   :  { %526 = vmatpush3.bf16.msra.mxu1 %v596_v17  ;;  %558 = vmatprep.subr.bf16.mxu0 %v659_v21 }
  0x31   :  { %527 = vmatprep.subr.bf16.mxu1 %v597_v18 }
  0x33   :  { %559 = vmatpush3.bf16.msra.mxu0 %v605_v44 }
  0x34   :  { %528 = vmatpush3.bf16.msra.mxu1 %v598_v19  ;;  %560 = vmatprep.subr.bf16.mxu0 %v659_v21 }
  0x35   :  { %566 = vmatprep.subr.bf16.mxu1 %v659_v21 }
  0x37   :  { %561 = vmatpush3.bf16.msra.mxu0 %v606_v45 }
  0x9e   :  { %v417_v2 = vpop.permute.xlu0 %416 }
  0xec   :  { %v111_v34 = vpop.f32.mrb[0].mxu0 }
  0xed   :  { %v112_v35 = vadd.f32 %v111_v34, %v56_v32  ;;  %v113_v36 = vpop.f32.mrb[1].mxu0 }
  0xee   :  { %v114_v37 = vadd.f32 %v113_v36, %v60_v33  ;;  %v115_v38 = vpop.f32.mrb[2].mxu0 }
  0xef   :  { %v118_v39 = vmax.f32 %v112_v35, 0.0  ;;  %v116_v40 = vpop.f32.mrb[3].mxu0 }
  0xf0   :  { %v119_v41 = vmax.f32 %v114_v37, 0.0 }
  0xf1   :  { %v120_v43 = vpack.c.bf16 %v118_v39, %v118_v39 }
  0xf2   :  { %v121_v42 = vpack.c.bf16 %v119_v41, %v119_v41 }
  0xf4   :  { %289 = vmatprep.mubr.bf16.mxu1 %v121_v42 }
  0xf5   :  { %290 = vmatmul.mubr.bf16.vlgmr.msra.gmra.mrb[0].mxu1 %v120_v43 }
  0xf6   :  { %568 = vmatprep.mubr.msk.bf16.mxu1 %vm660_vm1, %v659_v21 }
 0x1c8   :  { %v529_v46 = vpop.f32.mrb[0].mxu1 }
 0x1c9   :  { %v530_v48 = vpop.f32.mrb[1].mxu1 }
 0x1ca   :  { %v531_v49 = vadd.f32 %v530_v48, %v529_v46  ;;  %v532_v50 = vpop.f32.mrb[2].mxu1 }
 0x1cb   :  { %v533_v51 = vpop.f32.mrb[3].mxu1 }
 0x1cc   :  { %v292_v52 = vadd.f32 %v531_v49, %v486_v47 }
 0x1ce   :  { %v297_v53 = vmax.f32 %v292_v52, 0.0 }
 0x1d0   :  { %v298_v54 = vpack.c.bf16 %v297_v53, %v297_v53 }
 0x1d2   :  { %563 = vmatmul.mubr.bf16.vlgmr.msra.gmra.mrb[4].mxu0 %v298_v54 }
 0x2a5   :  { %v404_v57 = vpop.f32.mrb[4].mxu0 }
 0x2a6   :  { %v405_v58 = vadd.f32 %v503_v56, %v404_v57  ;;  %v564_v59 = vpop.f32.mrb[5].mxu0 }
 0x2a7   :  { %v407_v60 = vpop.f32.mrb[6].mxu0 }
 0x2a8   :  { %v410_v61 = vmax.f32 %v405_v58, 0.0  ;;  %v565_v62 = vpop.f32.mrb[7].mxu0 }
 0x2aa   :  { %v411_v63 = vpack.c.bf16 %v410_v61, %v410_v61 }
 0x2ac   :  { %v424_v0 = vsel %vm419_vm2, %v411_v63, 0 }
 0x2ad   :  { %567 = vmatpush3.bf16.xpose.msra.mxu1 %v424_v0 }
 0x2b4   :  { %569 = vmatmul.mubr.msk.bf16.vlgmr.msra.gmra.mrb[4].mxu1 %vm419_vm2, %v412_v1 }
 0x387   :  { %v460_v3 = vpop.f32.mrb[4].mxu1 }
 0x388   :  { %v461_v4 = vadd.f32 %v460_v3, %v417_v2  ;;  %v570_v5 = vpop.f32.mrb[5].mxu1 }
 0x389   :  { %v463_v6 = vpop.f32.mrb[6].mxu1 }
 0x38a   :  { %v571_v7 = vpop.f32.mrb[7].mxu1  ;;  %467 = vst.msk [vmem:[#allocation5] sm:$0xff] %vm466_vm3, %v461_v4 }
 0x38b   :  { %640 = shalt.err (!%p637_p12)
}
 0x38c   :  { %s641_s1 = scalar_lea.hbm %s793_s9, 128 }
 0x38d   :  { %p642_p13 = scmp.ne.s32.totalorder %s793_s9, %s641_s1  ;;  %p645_p0 = scmp.lt.u32.totalorder %s641_s1, %s793_s9 }
 0x38f   :  { %p647_p1 = pnand %p645_p0, %p642_p13 }
 0x391   :  { %650 = shalt.err (!%p647_p1)
}
 0x392   :  { %477 = dma.vmem_to_hbm [thread:$0]  %s475_s28, 128, %s793_s9, [#allocation4]  }
 0x393   :  { %653 = dma.done.wait [#allocation4], 128  }
 0x394   :  { %654 = vsyncadd [#allocation4], 4294967168 }
 0x395   :  { %481 = vsyncpa [#allocation3], 1 }
 0x396   :  { %482 = vsyncpa [#allocation4], 1 }

</bundles_post_ra>
